<compile_context>
chip_gen: v7x
topology: tpu7x:2x2x1
jax: 0.10.0
libtpu: 0.0.40
codegen_flags: <defaults>
</compile_context>

<pallas_src>
import functools

import jax
import jax.numpy as jnp
from jax.experimental import pallas as pl
from jax.experimental.pallas import tpu as pltpu

KH = KW = 3          # kernel_size = 3
EPS = 1e-5           # InstanceNorm2d default eps
NEG_SLOPE = 0.2      # LeakyReLU slope


def convblock_kernel(x_ref, w_ref, o_ref, col_ref, *, H, W):
    """One (batch element, Cout tile) per grid step.

    x_ref   : (Cin, Hp*Wp + 2)     bf16 zero-padded input, flat spatial on lanes
    w_ref   : (Cout_t, KH*KW*Cin)  bf16 weights as matmul LHS
    o_ref   : (Cout_t, H*Wp)       output (junk columns at w in {W, W+1})
    col_ref : (KH*KW*Cin, H*Wp)    bf16 im2col scratch (matmul RHS)
    """
    Wp = W + 2
    HWp = H * Wp
    Cin = x_ref.shape[0]

    # ---- build the im2col RHS: 9 flat-offset windows (static offsets) ----
    xv = x_ref[...]                                       # (Cin, L)
    for kh in range(KH):
        for kw in range(KW):
            t = kh * KW + kw
            off = kh * Wp + kw                            # static flat offset
            col_ref[t * Cin:(t + 1) * Cin, :] = xv[:, off:off + HWp]

    # ---- conv = single MXU matmul, K = 9*Cin, f32 accumulation ----
    conv = jnp.dot(w_ref[...], col_ref[...],
                   preferred_element_type=jnp.float32)    # (Cout_t, HWp) f32

    # ---- InstanceNorm2d (affine=False), single-pass masked statistics ----
    lane = jax.lax.broadcasted_iota(jnp.int32, (1, HWp), 1)
    valid = (lane % Wp) < W                               # drop junk columns
    inv_cnt = 1.0 / float(H * W)
    v = jnp.where(valid, conv, 0.0)
    mean = jnp.sum(v, axis=1, keepdims=True) * inv_cnt
    var = jnp.sum(v * v, axis=1, keepdims=True) * inv_cnt - mean * mean
    var = jnp.maximum(var, 0.0)
    y = (conv - mean) * jax.lax.rsqrt(var + EPS)

    # ---- LeakyReLU(0.2) ----
    y = jnp.where(y >= 0, y, NEG_SLOPE * y)
    o_ref[...] = y.astype(o_ref.dtype)


def conv_block(x_nchw, w_oihw):
    """ConvBlock forward. x_nchw: (N, Cin, H, W); w_oihw: (Cout, Cin, KH, KW)."""
    N, Cin, H, W = x_nchw.shape
    Cout = w_oihw.shape[0]
    Hp, Wp = H + 2, W + 2
    HWp = H * Wp
    L = Hp * Wp + (KW - 1)      # +2 so the last tap window stays in bounds

    # Zero-pad spatial dims, flatten, cast MXU operands to bf16 (one fused XLA
    # pass, no transposes).
    # TODO(synk): fold the zero-padding into the kernel (zero-init VMEM scratch
    # + interior DMA) to drop this wrapper pass entirely.
    x_pad = jnp.pad(x_nchw, ((0, 0), (0, 0), (1, 1), (1, 1)))
    x_flat = jnp.pad(x_pad.reshape(N, Cin, Hp * Wp),
                     ((0, 0), (0, 0), (0, KW - 1))).astype(jnp.bfloat16)
    # (Cout, Cin, KH, KW) -> (Cout, KH*KW*Cin), tap-major / cin-minor
    w_lhs = jnp.transpose(w_oihw, (0, 2, 3, 1)).reshape(
        Cout, KH * KW * Cin).astype(jnp.bfloat16)

    cout_t = Cout if Cout <= 128 else 128
    assert Cout % cout_t == 0, "Cout must be <=128 or a multiple of 128"
    grid = (N, Cout // cout_t)

    kernel = functools.partial(convblock_kernel, H=H, W=W)
    out_flat = pl.pallas_call(
        kernel,
        out_shape=jax.ShapeDtypeStruct((N, Cout, HWp), x_nchw.dtype),
        grid_spec=pltpu.PrefetchScalarGridSpec(
            num_scalar_prefetch=0,
            grid=grid,
            in_specs=[
                pl.BlockSpec((None, Cin, L), lambda n, j: (n, 0, 0)),
                pl.BlockSpec((cout_t, KH * KW * Cin), lambda n, j: (j, 0)),
            ],
            out_specs=pl.BlockSpec((None, cout_t, HWp), lambda n, j: (n, j, 0)),
            scratch_shapes=[pltpu.VMEM((KH * KW * Cin, HWp), jnp.bfloat16)],
        ),
        compiler_params=pltpu.CompilerParams(
            dimension_semantics=("parallel", "parallel"),
            vmem_limit_bytes=32 * 1024 * 1024),
    )(x_flat, w_lhs)

    # Drop the 2 junk columns per output row; result is already NCHW.
    # TODO(synk): for large H*W add an H-tile ("arbitrary") grid axis with a
    # two-pass sum/sumsq scheme so whole-image blocks are not required (v7x
    # has only 64 MiB VMEM).
    return out_flat.reshape(N, Cout, H, Wp)[:, :, :, :W]


def reference(x_nchw, w_oihw):
    """Pure-JAX reference for validation (matches PyTorch semantics)."""
    conv = jax.lax.conv_general_dilated(
        x_nchw, w_oihw, window_strides=(1, 1), padding=[(1, 1), (1, 1)],
        dimension_numbers=("NCHW", "OIHW", "NCHW"))
    mean = conv.mean(axis=(2, 3), keepdims=True)
    var = conv.var(axis=(2, 3), keepdims=True)
    normed = (conv - mean) / jnp.sqrt(var + EPS)
    return jnp.where(normed >= 0, normed, NEG_SLOPE * normed)


if __name__ == "__main__":
    key = jax.random.PRNGKey(0)
    kx, kw = jax.random.split(key)

    N, Cin, Cout, H, W = 2, 4, 8, 16, 16
    x = jax.random.normal(kx, (N, Cin, H, W), dtype=jnp.float32)
    # Deterministic weight init (kaiming-uniform-ish bound, like nn.Conv2d)
    fan_in = Cin * KH * KW
    bound = 1.0 / jnp.sqrt(fan_in)
    w = jax.random.uniform(kw, (Cout, Cin, KH, KW), dtype=jnp.float32,
                           minval=-bound, maxval=bound)

    out = jax.block_until_ready(conv_block(x, w))
    ref = jax.block_until_ready(reference(x, w))

    assert out.shape == (N, Cout, H, W)
    # bf16 MXU operands (f32 accumulation): tolerance is loosened accordingly;
    # outputs are unit-variance after InstanceNorm so atol=5e-2 is meaningful.
    assert jnp.allclose(out, ref, atol=5e-2, rtol=5e-2), "mismatch vs reference"

    print("KERNEL_OK")
</pallas_src>

<mosaic_0001>
module attributes {stable_mosaic.version = 11 : i64} {
  func.func @convblock_kernel(%arg0: i32, %arg1: i32, %arg2: memref<1x4x326xbf16, #tpu.memory_space<vmem>>, %arg3: memref<8x36xbf16, #tpu.memory_space<vmem>>, %arg4: memref<1x8x288xf32, #tpu.memory_space<vmem>>, %arg5: memref<36x288xbf16, #tpu.memory_space<vmem>>) attributes {dimension_semantics = [#tpu.dimension_semantics<parallel>, #tpu.dimension_semantics<parallel>], iteration_bounds = array<i64: 2, 1>, scalar_prefetch = 0 : i64, scratch_operands = 1 : i64, tpu.core_type = #tpu.core_type<tc>, window_params = [{transform_indices = @transform_0, window_bounds = array<i64: 1, 4, 326>}, {transform_indices = @transform_1, window_bounds = array<i64: 8, 36>}, {transform_indices = @transform_2, window_bounds = array<i64: 1, 8, 288>}]} {
    %c0 = arith.constant 0 : index
    %c0_0 = arith.constant 0 : index
    %c0_1 = arith.constant 0 : index
    %0 = vector.load %arg2[%c0, %c0_0, %c0_1] : memref<1x4x326xbf16, #tpu.memory_space<vmem>>, vector<1x4x326xbf16>
    %1 = vector.shape_cast %0 : vector<1x4x326xbf16> to vector<4x326xbf16>
    %2 = vector.extract_strided_slice %1 {offsets = [0, 0], sizes = [4, 288], strides = [1, 1]} : vector<4x326xbf16> to vector<4x288xbf16>
    %c0_2 = arith.constant 0 : index
    %c0_3 = arith.constant 0 : index
    %3 = vector.load %arg5[%c0_2, %c0_3] : memref<36x288xbf16, #tpu.memory_space<vmem>>, vector<4x288xbf16>
    tpu.vector_store %arg5[%c0_2, %c0_3], %2 {strides = array<i32>} : memref<36x288xbf16, #tpu.memory_space<vmem>>, vector<4x288xbf16>,
    %4 = vector.extract_strided_slice %1 {offsets = [0, 1], sizes = [4, 288], strides = [1, 1]} : vector<4x326xbf16> to vector<4x288xbf16>
    %c4 = arith.constant 4 : index
    %c0_4 = arith.constant 0 : index
    %5 = vector.load %arg5[%c4, %c0_4] : memref<36x288xbf16, #tpu.memory_space<vmem>>, vector<4x288xbf16>
    tpu.vector_store %arg5[%c4, %c0_4], %4 {strides = array<i32>} : memref<36x288xbf16, #tpu.memory_space<vmem>>, vector<4x288xbf16>,
    %6 = vector.extract_strided_slice %1 {offsets = [0, 2], sizes = [4, 288], strides = [1, 1]} : vector<4x326xbf16> to vector<4x288xbf16>
    %c8 = arith.constant 8 : index
    %c0_5 = arith.constant 0 : index
    %7 = vector.load %arg5[%c8, %c0_5] : memref<36x288xbf16, #tpu.memory_space<vmem>>, vector<4x288xbf16>
    tpu.vector_store %arg5[%c8, %c0_5], %6 {strides = array<i32>} : memref<36x288xbf16, #tpu.memory_space<vmem>>, vector<4x288xbf16>,
    %8 = vector.extract_strided_slice %1 {offsets = [0, 18], sizes = [4, 288], strides = [1, 1]} : vector<4x326xbf16> to vector<4x288xbf16>
    %c12 = arith.constant 12 : index
    %c0_6 = arith.constant 0 : index
    %9 = vector.load %arg5[%c12, %c0_6] : memref<36x288xbf16, #tpu.memory_space<vmem>>, vector<4x288xbf16>
    tpu.vector_store %arg5[%c12, %c0_6], %8 {strides = array<i32>} : memref<36x288xbf16, #tpu.memory_space<vmem>>, vector<4x288xbf16>,
    %10 = vector.extract_strided_slice %1 {offsets = [0, 19], sizes = [4, 288], strides = [1, 1]} : vector<4x326xbf16> to vector<4x288xbf16>
    %c16 = arith.constant 16 : index
    %c0_7 = arith.constant 0 : index
    %11 = vector.load %arg5[%c16, %c0_7] : memref<36x288xbf16, #tpu.memory_space<vmem>>, vector<4x288xbf16>
    tpu.vector_store %arg5[%c16, %c0_7], %10 {strides = array<i32>} : memref<36x288xbf16, #tpu.memory_space<vmem>>, vector<4x288xbf16>,
    %12 = vector.extract_strided_slice %1 {offsets = [0, 20], sizes = [4, 288], strides = [1, 1]} : vector<4x326xbf16> to vector<4x288xbf16>
    %c20 = arith.constant 20 : index
    %c0_8 = arith.constant 0 : index
    %13 = vector.load %arg5[%c20, %c0_8] : memref<36x288xbf16, #tpu.memory_space<vmem>>, vector<4x288xbf16>
    tpu.vector_store %arg5[%c20, %c0_8], %12 {strides = array<i32>} : memref<36x288xbf16, #tpu.memory_space<vmem>>, vector<4x288xbf16>,
    %14 = vector.extract_strided_slice %1 {offsets = [0, 36], sizes = [4, 288], strides = [1, 1]} : vector<4x326xbf16> to vector<4x288xbf16>
    %c24 = arith.constant 24 : index
    %c0_9 = arith.constant 0 : index
    %15 = vector.load %arg5[%c24, %c0_9] : memref<36x288xbf16, #tpu.memory_space<vmem>>, vector<4x288xbf16>
    tpu.vector_store %arg5[%c24, %c0_9], %14 {strides = array<i32>} : memref<36x288xbf16, #tpu.memory_space<vmem>>, vector<4x288xbf16>,
    %16 = vector.extract_strided_slice %1 {offsets = [0, 37], sizes = [4, 288], strides = [1, 1]} : vector<4x326xbf16> to vector<4x288xbf16>
    %c28 = arith.constant 28 : index
    %c0_10 = arith.constant 0 : index
    %17 = vector.load %arg5[%c28, %c0_10] : memref<36x288xbf16, #tpu.memory_space<vmem>>, vector<4x288xbf16>
    tpu.vector_store %arg5[%c28, %c0_10], %16 {strides = array<i32>} : memref<36x288xbf16, #tpu.memory_space<vmem>>, vector<4x288xbf16>,
    %18 = vector.extract_strided_slice %1 {offsets = [0, 38], sizes = [4, 288], strides = [1, 1]} : vector<4x326xbf16> to vector<4x288xbf16>
    %c32 = arith.constant 32 : index
    %c0_11 = arith.constant 0 : index
    %19 = vector.load %arg5[%c32, %c0_11] : memref<36x288xbf16, #tpu.memory_space<vmem>>, vector<4x288xbf16>
    tpu.vector_store %arg5[%c32, %c0_11], %18 {strides = array<i32>} : memref<36x288xbf16, #tpu.memory_space<vmem>>, vector<4x288xbf16>,
    %c0_12 = arith.constant 0 : index
    %c0_13 = arith.constant 0 : index
    %20 = vector.load %arg3[%c0_12, %c0_13] : memref<8x36xbf16, #tpu.memory_space<vmem>>, vector<8x36xbf16>
    %c0_14 = arith.constant 0 : index
    %c0_15 = arith.constant 0 : index
    %21 = vector.load %arg5[%c0_14, %c0_15] : memref<36x288xbf16, #tpu.memory_space<vmem>>, vector<36x288xbf16>
    %cst = arith.constant dense<0.000000e+00> : vector<8x288xf32>
    %22 = tpu.matmul %20, %21, %cst {dimension_numbers = #tpu.dot_dimension_numbers<[1], [0], [0], [1], [0, 0, 1, 1], [], []>} : vector<8x36xbf16>, vector<36x288xbf16>, vector<8x288xf32> -> vector<8x288xf32>
    %23 = tpu.iota {dimensions = array<i32: 1>} : vector<1x288xi32>
    %c18_i32 = arith.constant 18 : i32
    %c0_i32 = arith.constant 0 : i32
    %24 = arith.cmpi eq, %c18_i32, %c0_i32 : i32
    %c1_i32 = arith.constant 1 : i32
    %25 = arith.select %24, %c1_i32, %c18_i32 : i32
    %26 = vector.broadcast %25 : i32 to vector<1x288xi32>
    %27 = arith.remsi %23, %26 : vector<1x288xi32>
    %c0_i32_16 = arith.constant 0 : i32
    %28 = vector.broadcast %c0_i32_16 : i32 to vector<1x288xi32>
    %29 = arith.cmpi ne, %27, %28 : vector<1x288xi32>
    %c0_i32_17 = arith.constant 0 : i32
    %30 = vector.broadcast %c0_i32_17 : i32 to vector<1x288xi32>
    %31 = arith.cmpi slt, %27, %30 : vector<1x288xi32>
    %c0_i32_18 = arith.constant 0 : i32
    %32 = arith.cmpi slt, %25, %c0_i32_18 : i32
    %33 = vector.broadcast %32 : i1 to vector<1x288xi1>
    %34 = vector.broadcast %33 : vector<1x288xi1> to vector<1x288xi1>
    %35 = arith.xori %31, %34 : vector<1x288xi1>
    %36 = arith.andi %35, %29 : vector<1x288xi1>
    %37 = vector.broadcast %25 : i32 to vector<1x288xi32>
    %38 = arith.addi %27, %37 : vector<1x288xi32>
    %39 = arith.select %36, %38, %27 : vector<1x288xi1>, vector<1x288xi32>
    %c16_i32 = arith.constant 16 : i32
    %40 = vector.broadcast %c16_i32 : i32 to vector<1x288xi32>
    %41 = arith.cmpi slt, %39, %40 : vector<1x288xi32>
    %cst_19 = arith.constant 0.000000e+00 : f32
    %42 = vector.shape_cast %41 : vector<1x288xi1> to vector<1x288xi1>
    %43 = vector.broadcast %42 : vector<1x288xi1> to vector<8x288xi1>
    %44 = vector.broadcast %cst_19 : f32 to vector<8x288xf32>
    %45 = arith.select %43, %22, %44 : vector<8x288xi1>, vector<8x288xf32>
    %cst_20 = arith.constant dense<0.000000e+00> : vector<8xf32>
    %46 = vector.multi_reduction <add>, %45, %cst_20 [1] : vector<8x288xf32> to vector<8xf32>
    %47 = vector.shape_cast %46 : vector<8xf32> to vector<8x1xf32>
    %cst_21 = arith.constant 3.906250e-03 : f32
    %48 = vector.broadcast %cst_21 : f32 to vector<8x1xf32>
    %49 = arith.mulf %47, %48 : vector<8x1xf32>
    %50 = arith.mulf %45, %45 : vector<8x288xf32>
    %cst_22 = arith.constant dense<0.000000e+00> : vector<8xf32>
    %51 = vector.multi_reduction <add>, %50, %cst_22 [1] : vector<8x288xf32> to vector<8xf32>
    %52 = vector.shape_cast %51 : vector<8xf32> to vector<8x1xf32>
    %cst_23 = arith.constant 3.906250e-03 : f32
    %53 = vector.broadcast %cst_23 : f32 to vector<8x1xf32>
    %54 = arith.mulf %52, %53 : vector<8x1xf32>
    %55 = arith.mulf %49, %49 : vector<8x1xf32>
    %56 = arith.subf %54, %55 : vector<8x1xf32>
    %cst_24 = arith.constant 0.000000e+00 : f32
    %57 = vector.broadcast %cst_24 : f32 to vector<8x1xf32>
    %58 = arith.maximumf %56, %57 : vector<8x1xf32>
    %59 = vector.broadcast %49 : vector<8x1xf32> to vector<8x288xf32>
    %60 = arith.subf %22, %59 : vector<8x288xf32>
    %cst_25 = arith.constant 9.99999974E-6 : f32
    %61 = vector.broadcast %cst_25 : f32 to vector<8x1xf32>
    %62 = arith.addf %58, %61 : vector<8x1xf32>
    %63 = math.rsqrt %62 : vector<8x1xf32>
    %64 = vector.broadcast %63 : vector<8x1xf32> to vector<8x288xf32>
    %65 = arith.mulf %60, %64 : vector<8x288xf32>
    %cst_26 = arith.constant 0.000000e+00 : f32
    %66 = vector.broadcast %cst_26 : f32 to vector<8x288xf32>
    %67 = arith.cmpf oge, %65, %66 : vector<8x288xf32>
    %cst_27 = arith.constant 2.000000e-01 : f32
    %68 = vector.broadcast %cst_27 : f32 to vector<8x288xf32>
    %69 = arith.mulf %68, %65 : vector<8x288xf32>
    %70 = arith.select %67, %65, %69 : vector<8x288xi1>, vector<8x288xf32>
    %c0_28 = arith.constant 0 : index
    %c0_29 = arith.constant 0 : index
    %c0_30 = arith.constant 0 : index
    %71 = vector.load %arg4[%c0_28, %c0_29, %c0_30] : memref<1x8x288xf32, #tpu.memory_space<vmem>>, vector<1x8x288xf32>
    %72 = vector.shape_cast %71 : vector<1x8x288xf32> to vector<8x288xf32>
    %73 = vector.shape_cast %70 : vector<8x288xf32> to vector<1x8x288xf32>
    tpu.vector_store %arg4[%c0_28, %c0_29, %c0_30], %73 {strides = array<i32>} : memref<1x8x288xf32, #tpu.memory_space<vmem>>, vector<1x8x288xf32>,
    return
  }
  func.func @transform_0(%arg0: i32, %arg1: i32) -> (i32, i32, i32) {
    %c0_i32 = arith.constant 0 : i32
    %c0_i32_0 = arith.constant 0 : i32
    %c0_i32_1 = arith.constant 0 : i32
    return %arg0, %c0_i32, %c0_i32_0 : i32, i32, i32
  }
  func.func @transform_1(%arg0: i32, %arg1: i32) -> (i32, i32) {
    %c0_i32 = arith.constant 0 : i32
    %c0_i32_0 = arith.constant 0 : i32
    return %arg1, %c0_i32 : i32, i32
  }
  func.func @transform_2(%arg0: i32, %arg1: i32) -> (i32, i32, i32) {
    %c0_i32 = arith.constant 0 : i32
    %c0_i32_0 = arith.constant 0 : i32
    return %arg0, %arg1, %c0_i32 : i32, i32, i32
  }
}

</mosaic_0001>

<bundles_post_ra>
// kernel: tpu_custom_call.1
= control target key start
LH: loop header
LB: loop body
LE: loop exit
PB: predicated region body
PF: predicated region fallthrough
CT: control target
= control target key end

     0   :  { %7 = vsyncpa [#allocation4], 0  ;;  %s1268_s0 = inlined_call_operand.hbm [shape: bf16[2,4,326], index: 0, kind: input, shape index: {}]   ;;  %s1269_s1 = inlined_call_operand.hbm [shape: bf16[8,36], index: 1, kind: input, shape index: {}]   ;;  %s1270_s2 = inlined_call_operand.hbm [shape: f32[2,8,288], index: 2, kind: output, shape index: {}]  }
   0x1   :  { %9 = vsyncpa [#allocation4 + $0x1], 0 }
   0x2   :  { %10 = vsyncpa [#allocation7], 0 }
   0x3   :  { %11 = vsyncpa [#allocation5], 0 }
   0x4   :  { %13 = vsyncpa [#allocation5 + $0x1], 0  ;;  %s1013_s9 = smov 0   ;;  %s1015_s10 = smov 0  }
   0x5   :  { %s1017_s11 = smov 0   ;;  %s1019_s12 = smov 0  }
   0x6   :  { %s1021_s13 = smov 0   ;;  %s1023_s14 = smov 0  }
   0x7 LB: > { %s690_s15 = sadd.s32 4294967295, %s981_s14   ;;  %s691_s16 = sadd.s32 4294967294, %s981_s14   ;;  %s981_s14 = sphi %s1023_s14, %s19_s14   ;;  %s977_s13 = sphi %s1021_s13, %s1295_s13   ;;  %s973_s12 = sphi %s1019_s12, %s1294_s12   ;;  %s969_s11 = sphi %s1017_s11, %s1293_s11   ;;  %s965_s10 = sphi %s1015_s10, %s1292_s10   ;;  %s961_s9 = sphi %s1013_s9, %s1291_s9  }
   0x8   : > { %p51_p0 = scmp.ne.s32.totalorder %s965_s10, %s961_s9  ;;  %p1047_p1 = scmp.eq.s32.totalorder %s690_s15, 0 }
   0x9   : > { %p1051_p2 = scmp.eq.s32.totalorder %s690_s15, 1  ;;  %p109_p3 = scmp.eq.s32.totalorder %s691_s16, 1 }
   0xa   : > { %s1275_s17 = scalar_select %p1047_p1, 1, 0 }
   0xb   : > { %s1276_s18 = scalar_select %p1051_p2, 1, 0 }
   0xc   : > { %p1057_p4 = por %p1047_p1, %p51_p0  ;;  %p692_p5 = scmp.ge.s32.totalorder %s981_s14, 1 }
   0xd   : > { %p1062_p6 = por %p109_p3, %p51_p0  ;;  %p116_p7 = scmp.lt.s32.totalorder %s981_s14, 3 }
   0xe   : > { %s1277_s19 = scalar_select %p1057_p4, 1, 0 }
   0xf   : > { %s1278_s20 = scalar_select %p1062_p6, 1, 0 }
  0x10   : > { %p1067_p8 = pnand %p692_p5, %p116_p7  ;;  %s983_s22 = smov [#allocation6]  }
  0x11   : > { %s131_s23 = sshll.u32 %s983_s22, 4  ;;  %s31_s25 = sadd.s32 1, %s977_s13  ;;  %s132_s23 = int_to_ptr.vmem [resolvable:$true] %s131_s23 }
  0x12   : > { %s1279_s21 = scalar_select %p1067_p8, 1, 0 }
  0x13   : > { %p747_p10 = pneg %p1067_p8  ;;  %s38_s26 = sadd.s32 1, %s969_s11 }
  0x14   : > { %p1082_p12 = scmp.ge.s32.totalorder %s31_s25, 2  ;;  %s837_s30 = scalar_lea.hbm %s1269_s1, 64 }
  0x15   : > { %p1076_p11 = pnand %p747_p10, %p1047_p1  ;;  %p838_p13 = scmp.ne.s32.totalorder %s1269_s1, %s837_s30 }
  0x16   : > { %s1281_s27 = scalar_select %p1082_p12, 1, 0 }
  0x17   : > { %p839_p0 = pneg %p1076_p11  ;;  %p844_p7 = scmp.lt.u32.totalorder %s837_s30, %s1269_s1 }
  0x19   : > { %p840_p3 = pnand %p839_p0, %p838_p13 }
  0x1b   : > { %p841_p5 = pneg %p840_p3 }
  0x1d   : > { %p846_p10 = pnand %p844_p7, %p841_p5 }
  0x1f   : > { %849 = shalt.err (!%p846_p10)
}
  0x20   : > { %s850_s7 = scalar_lea.vmem %s132_s23, 64  ;;  %p858_p4 = scmp.lt.s32.totalorder %s132_s23, %s132_s23 }
  0x21   : > { %p851_p9 = scmp.ne.s32.totalorder %s132_s23, %s850_s7  ;;  %p859_p8 = scmp.lt.s32.totalorder %s850_s7, %s850_s7 }
  0x23   : > { %p853_p6 = pnand %p851_p9, %p839_p0  ;;  %p860_p2 = por %p859_p8, %p858_p4 }
  0x25   : > { %p854_p1 = pneg %p853_p6 }
  0x27   : > { %p861_p12 = pnand %p860_p2, %p854_p1 }
  0x29   : > { %864 = shalt.err (!%p861_p12)
}
  0x2a   : > { %750 = dma.hbm_to_vmem [thread:$0]  (!%p1076_p11), %s1269_s1, 64, %s132_s23, [#allocation7]  }
  0x2b   : > { %p1282_p4 = scmp.ne.s32.totalorder %s1281_s27, 0  ;;  %p45_p1 = scmp.ne.s32.totalorder %s969_s11, %s965_s10 }
  0x2c   : > { %p46_p2 = scmp.eq.s32.totalorder %s981_s14, 0  ;;  %p760_p6 = scmp.lt.s32.totalorder %s981_s14, 2 }
  0x2d   : > { %s1297_s25 = smov (%p1282_p4, %s31_s25), 0  ;;  %p1283_p12 = scmp.ne.s32.totalorder %s1276_s18, 0 }
  0x2e   : > { %s35_s16 = ssub.s32 %s977_s13, %s1297_s25  ;;  %p47_p9 = por %p46_p2, %p45_p1 }
  0x2f   : > { %p36_p8 = scmp.eq.s32.totalorder %s35_s16, 0  ;;  %p1114_p13 = por %p1283_p12, %p45_p1 }
  0x30   : > { %s142_s24 = sand.u32 1, %s969_s11   ;;  %s729_s27 = smul.u32 96, %s977_s13 }
  0x31   : > { %s1122_s28 = scalar_select %p36_p8, %s969_s11, %s38_s26  }
  0x32   : > { %s728_s23 = smul.u32 6, %s142_s24  ;;  %p1125_p11 = pnand %p760_p6, %p47_p9 }
  0x33   : > { %s1132_s18 = scalar_lea.hbm %s1268_s0, %s729_s27  ;;  %s143_s5 = scalar_lea.sflag [#allocation4], %s142_s24 }
  0x34   : > { %s146_s4 = scalar_lea.vmem [#allocation3], %s728_s23  ;;  %s865_s6 = scalar_lea.hbm %s1132_s18, 96 }
  0x35   : > { %s154_s26 = sshll.u32 %s146_s4, 4  ;;  %p866_p0 = scmp.ne.s32.totalorder %s1132_s18, %s865_s6  ;;  %s1134_s26 = int_to_ptr.vmem [resolvable:$true] %s154_s26 }
  0x36   : > { %p867_p3 = pneg %p1125_p11  ;;  %s870_s15 = scalar_lea.hbm %s1268_s0, 192 }
  0x37   : > { %p871_p10 = scmp.lt.u32.totalorder %s1132_s18, %s1268_s0  ;;  %p872_p4 = scmp.lt.u32.totalorder %s870_s15, %s865_s6 }
  0x38   : > { %p868_p5 = pnand %p867_p3, %p866_p0  ;;  %p874_p2 = scmp.lt.u32.totalorder %s865_s6, %s1132_s18 }
  0x39   : > { %p873_p1 = por %p872_p4, %p871_p10 }
  0x3a   : > { %p869_p7 = pneg %p868_p5 }
  0x3b   : > { %p875_p6 = por %p874_p2, %p873_p1 }
  0x3d   : > { %p876_p8 = pnand %p875_p6, %p869_p7 }
  0x3f   : > { %879 = shalt.err (!%p876_p8)
}
  0x40   : > { %s880_s24 = scalar_lea.vmem %s1134_s26, 96  ;;  %s984_s23 = smov [#allocation3]  }
  0x41   : > { %p881_p9 = scmp.ne.s32.totalorder %s1134_s26, %s880_s24  ;;  %s885_s30 = sshll.u32 %s984_s23, 4  ;;  %s886_s30 = int_to_ptr.vmem [resolvable:$false] %s885_s30 }
  0x42   : > { %s887_s3 = scalar_lea.vmem %s886_s30, 192  ;;  %p888_p5 = scmp.lt.s32.totalorder %s1134_s26, %s886_s30 }
  0x43   : > { %p883_p12 = pnand %p881_p9, %p867_p3  ;;  %p889_p10 = scmp.lt.s32.totalorder %s887_s3, %s880_s24 }
  0x45   : > { %p884_p0 = pneg %p883_p12  ;;  %p890_p4 = por %p889_p10, %p888_p5 }
  0x47   : > { %p891_p1 = pnand %p890_p4, %p884_p0 }
  0x49   : > { %894 = shalt.err (!%p891_p1)
}
  0x4a   : > { %754 = dma.hbm_to_vmem [thread:$0]  (!%p1125_p11), %s1132_s18, 96, %s1134_s26, %s143_s5  }
  0x4b   : > { %p1286_p7 = scmp.ne.s32.totalorder %s1279_s21, 0 }
  0x4c   : > { %s1164_s4 = sand.u32 (!%p1286_p7), 1, %s965_s10   ;;  %p1287_p3 = scmp.ne.s32.totalorder (!%p1286_p7), %s1277_s19, 0 }
  0x4d   : > { %163 = sbr.rel (%p1286_p7) target bundleno = 659 (0x293), region = 28  ;;  %s166_s7 = scalar_lea.sflag (!%p1286_p7), [#allocation4], %s1164_s4 }
  0x4e   : > { %s730_s6 = smul.u32 (!%p1286_p7), 6, %s1164_s4 }
  0x50   : > { %s169_s8 = scalar_lea.vmem (!%p1286_p7), [#allocation3], %s730_s6 }
  0x54   : > { %948 = dma.done.wait (%p1287_p3), %s166_s7, 96  }
  0x55   : > { %950 = vsyncadd (%p1287_p3), %s166_s7, 4294967200  ;;  %p1288_p2 = scmp.ne.s32.totalorder %s1275_s17, 0 }
  0x57   : > { %952 = dma.done.wait (%p1288_p2), [#allocation7], 64  }
  0x58   : > { %954 = vsyncadd (%p1288_p2), [#allocation7], 4294967232  ;;  %v201_v0 = vlaneseq  ;;  %v985_v1 = vmov 1983009808   ;;  %v195_v6 = vld [vmem:[%s169_s8] sm:$0x3f] }
  0x59   : > { %v199_v2 = vunpack.c.l.s4 %v985_v1  ;;  %698 = vst.sshfl [vmem:[#allocation2] sm:$0xf pattern:$0x76325410] %v195_v6  ;;  %v197_v8 = vcombine.high %v195_v6, %v195_v6  ;;  %vm215_vm0 = vcmask 254976   ;;  %s986_s19 = smov 126   ;;  %v217_v9 = vcombine.low %v195_v6, %v195_v6 }
  0x5a   : > { %v202_v3 = vshrl.u32 %v201_v0, 7  ;;  %s987_s21 = smov 127   ;;  %v988_v11 = vmov 0.0   ;;  %s989_s17 = smov 110   ;;  %vm995_vm1 = vmmov 0   ;;  %v996_v13 = vmov 0  }
  0x5b   : > { %v200_v4 = vunpack.c.0.s8 %v199_v2  ;;  %718 = vmatprep.subr.bf16.mxu1 %v988_v11  ;;  %s990_s29 = smov 109   ;;  %s991_s18 = smov 108   ;;  %724 = vmatprep.mubr.msk.bf16.mxu1 %vm995_vm1, %v988_v11  ;;  %vm238_vm2 = vcmask 257026   ;;  %vm231_vm3 = vcmask 1043456   ;;  %vm233_vm4 = vcmask 1039360  }
  0x5c   : > { %s992_s26 = smov 92   ;;  %s993_s5 = smov 91   ;;  %428 = vmatprep.mubr.bf16.mxu0 %v996_v13  ;;  %vm247_vm5 = vcmask 1031168   ;;  %vm260_vm6 = vcmask 900096   ;;  %vm273_vm7 = vcmask 891904   ;;  %vm286_vm8 = vcmask 883712  }
  0x5d   : > { %v203_v5 = vsub.s32 %v200_v4, %v202_v3  ;;  %s994_s15 = smov 90   ;;  %vm299_vm9 = vcmask 752640   ;;  %vm312_vm10 = vcmask 744448   ;;  %vm325_vm11 = vcmask 736256   ;;  %s731_s16 = smul.u32 24, %s1164_s4 }
  0x5e   : > { %vm386_vm12 = vcmask 1041408   ;;  %vm382_vm13 = vcmask 293888   ;;  %s738_s27 = smul.u32 384, %s973_s12  ;;  %s581_s12 = scalar_lea.sflag [#allocation5], %s1164_s4 }
  0x5f   : > { %v204_v7 = vrot.slane %v195_v6, %v203_v5  ;;  %v211_v10 = vrot.slane %v197_v8, %v203_v5  ;;  %v224_v12 = vrot.slane %v217_v9, %v203_v5  ;;  %v331_v8 = vld [vmem:[#allocation6] sm:$0xf]  ;;  %s193_s24 = scalar_lea.vmem [#allocation8], %s731_s16  ;;  %s997_s8 = smov [#allocation8]  }
  0x60   : > { %s597_s23 = sshll.u32 %s193_s24, 4  ;;  %s1218_s6 = scalar_lea.hbm %s1270_s2, %s738_s27  ;;  %s1220_s23 = int_to_ptr.vmem [resolvable:$true] %s597_s23 }
  0x61   : > { %240 = vrot.lane.b32.xlu1 %v204_v7, %s986_s19  ;;  %227 = vrot.lane.b32.xlu0 %v204_v7, %s987_s21  ;;  %216 = vst.msk [vmem:[#allocation2 + $0x8] sm:$0x3] %vm215_vm0, %v211_v10  ;;  %s895_s7 = scalar_lea.vmem %s1220_s23, 384 }
  0x62   : > { %p896_p11 = scmp.ne.s32.totalorder %s1220_s23, %s895_s7 }
  0x64   : > { %p897_p6 = pnand %p896_p11, %p1114_p13 }
  0x65   : > { %255 = vrot.lane.b32.xlu1 %v204_v7, %s989_s17  ;;  %266 = vrot.lane.b32.xlu0 %v204_v7, %s990_s29 }
  0x66   : > { %p898_p8 = pneg %p897_p6 }
  0x69   : > { %225 = vrot.lane.b32.xlu0 %v224_v12, %s987_s21  ;;  %242 = vrot.lane.b32.xlu1 %v211_v10, %s986_s19  ;;  %s899_s19 = sshll.u32 %s997_s8, 4  ;;  %s900_s19 = int_to_ptr.vmem [resolvable:$false] %s899_s19 }
  0x6a   : > { %s901_s21 = scalar_lea.vmem %s900_s19, 768  ;;  %p902_p9 = scmp.lt.s32.totalorder %s1220_s23, %s900_s19 }
  0x6b   : > { %p903_p12 = scmp.lt.s32.totalorder %s901_s21, %s895_s7 }
  0x6d   : > { %253 = vrot.lane.b32.xlu0 %v224_v12, %s989_s17  ;;  %268 = vrot.lane.b32.xlu1 %v211_v10, %s990_s29  ;;  %p904_p0 = por %p903_p12, %p902_p9 }
  0x6f   : > { %p905_p5 = pnand %p904_p0, %p898_p8 }
  0x71   : > { %279 = vrot.lane.b32.xlu0 %v224_v12, %s991_s18  ;;  %281 = vrot.lane.b32.xlu1 %v204_v7, %s991_s18 }
  0x75   : > { %292 = vrot.lane.b32.xlu0 %v204_v7, %s992_s26  ;;  %294 = vrot.lane.b32.xlu1 %v211_v10, %s992_s26 }
  0x79   : > { %305 = vrot.lane.b32.xlu0 %v224_v12, %s993_s5  ;;  %307 = vrot.lane.b32.xlu1 %v204_v7, %s993_s5 }
  0x7d   : > { %318 = vrot.lane.b32.xlu0 %v204_v7, %s994_s15  ;;  %320 = vrot.lane.b32.xlu1 %v211_v10, %s994_s15 }
  0xd3   : > { %v241_v14 = vpop.permute.xlu1 %240  ;;  %v228_v15 = vpop.permute.xlu0 %227 }
  0xd4   : > { %239 = vst.msk [vmem:[#allocation2 + $0x8] sm:$0xc] %vm238_vm2, %v228_v15  ;;  %v244_v20 = vrot.slane %v241_v14, 4  ;;  %v230_v21 = vrot.slane %v228_v15, 4 }
  0xd7   : > { %v256_v16 = vpop.permute.xlu1 %255  ;;  %v267_v17 = vpop.permute.xlu0 %266 }
  0xd8   : > { %265 = vst.msk [vmem:[#allocation2 + $0x14] sm:$0xc] %vm238_vm2, %v256_v16  ;;  %v258_v30 = vrot.slane %v256_v16, 4  ;;  %v270_v31 = vrot.slane %v267_v17, 4 }
  0xdb   : > { %v226_v18 = vpop.permute.xlu0 %225  ;;  %v243_v19 = vpop.permute.xlu1 %242 }
  0xdc   : > { %v229_v22 = vrot.slane %v226_v18, 4  ;;  %v245_v23 = vrot.slane %v243_v19, 4  ;;  %252 = vst.msk [vmem:[#allocation2 + $0x14] sm:$0x3] %vm215_vm0, %v243_v19 }
  0xde   : > { %v232_v24 = vsel %vm231_vm3, %v229_v22, %v230_v21  ;;  %v246_v25 = vsel %vm231_vm3, %v244_v20, %v245_v23 }
  0xdf   : > { %v234_v26 = vsel %vm233_vm4, %v226_v18, %v232_v24  ;;  %v248_v27 = vsel %vm247_vm5, %v241_v14, %v246_v25  ;;  %v254_v28 = vpop.permute.xlu0 %253  ;;  %v269_v29 = vpop.permute.xlu1 %268 }
  0xe0   : > { %237 = vst [vmem:[#allocation2] sm:$0xcc] %v234_v26  ;;  %251 = vst [vmem:[#allocation2 + $0xc] sm:$0x33] %v248_v27  ;;  %v257_v32 = vrot.slane %v254_v28, 4  ;;  %v271_v33 = vrot.slane %v269_v29, 4 }
  0xe1   : > { %278 = vst.msk [vmem:[#allocation2 + $0x20] sm:$0x3] %vm215_vm0, %v269_v29 }
  0xe2   : > { %v259_v34 = vsel %vm231_vm3, %v257_v32, %v258_v30  ;;  %v272_v35 = vsel %vm231_vm3, %v270_v31, %v271_v33 }
  0xe3   : > { %v261_v36 = vsel %vm260_vm6, %v254_v28, %v259_v34  ;;  %v274_v37 = vsel %vm273_vm7, %v267_v17, %v272_v35  ;;  %v280_v38 = vpop.permute.xlu0 %279  ;;  %v282_v39 = vpop.permute.xlu1 %281  ;;  %v824_v40 = vld [vmem:[#allocation2 + $0x8] ss:$12 sps:$4 sm:$0xff]  }
  0xe4   : > { %264 = vst [vmem:[#allocation2 + $0xc] sm:$0xcc] %v261_v36  ;;  %277 = vst [vmem:[#allocation2 + $0x18] sm:$0x33] %v274_v37  ;;  %v283_v41 = vrot.slane %v280_v38, 4  ;;  %v284_v42 = vrot.slane %v282_v39, 4  ;;  %719 = vmatpush3.bf16.msra.mxu1 %v824_v40 }
  0xe5   : > { %291 = vst.msk [vmem:[#allocation2 + $0x20] sm:$0xc] %vm238_vm2, %v282_v39  ;;  %720 = vmatprep.subr.bf16.mxu1 %v988_v11 }
  0xe6   : > { %v285_v43 = vsel %vm231_vm3, %v283_v41, %v284_v42 }
  0xe7   : > { %v287_v44 = vsel %vm286_vm8, %v280_v38, %v285_v43  ;;  %v293_v45 = vpop.permute.xlu0 %292  ;;  %v295_v46 = vpop.permute.xlu1 %294 }
  0xe8   : > { %290 = vst [vmem:[#allocation2 + $0x18] sm:$0xcc] %v287_v44  ;;  %v296_v47 = vrot.slane %v293_v45, 4  ;;  %v297_v48 = vrot.slane %v295_v46, 4  ;;  %304 = vst.msk [vmem:[#allocation2 + $0x2c] sm:$0x3] %vm215_vm0, %v295_v46 }
  0xea   : > { %v298_v49 = vsel %vm231_vm3, %v296_v47, %v297_v48 }
  0xeb   : > { %v300_v50 = vsel %vm299_vm9, %v293_v45, %v298_v49  ;;  %v306_v51 = vpop.permute.xlu0 %305  ;;  %v308_v52 = vpop.permute.xlu1 %307  ;;  %v825_v53 = vld [vmem:[#allocation2 + $0x4] ss:$12 sps:$4 sm:$0xff]   ;;  %v827_v54 = vld [vmem:[#allocation2] ss:$12 sps:$4 sm:$0xff]  }
  0xec   : > { %303 = vst [vmem:[#allocation2 + $0x24] sm:$0x33] %v300_v50  ;;  %v309_v55 = vrot.slane %v306_v51, 4  ;;  %v310_v56 = vrot.slane %v308_v52, 4  ;;  %317 = vst.msk [vmem:[#allocation2 + $0x2c] sm:$0xc] %vm238_vm2, %v308_v52  ;;  %396 = vmatprep.subr.bf16.mxu0 %v825_v53 }
  0xed   : > { %397 = vmatpush1.bf16.msra.mxu0 %v827_v54 }
  0xee   : > { %v311_v57 = vsel %vm231_vm3, %v309_v55, %v310_v56 }
  0xef   : > { %v313_v58 = vsel %vm312_vm10, %v306_v51, %v311_v57  ;;  %v319_v59 = vpop.permute.xlu0 %318  ;;  %v321_v60 = vpop.permute.xlu1 %320  ;;  %vm542_vm10 = vcmask 261120  }
  0xf0   : > { %316 = vst [vmem:[#allocation2 + $0x24] sm:$0xcc] %v313_v58  ;;  %v322_v61 = vrot.slane %v319_v59, 4  ;;  %v323_v62 = vrot.slane %v321_v60, 4  ;;  %330 = vst.msk [vmem:[#allocation2 + $0x38] sm:$0x3] %vm215_vm0, %v321_v60 }
  0xf2   : > { %v324_v63 = vsel %vm231_vm3, %v322_v61, %v323_v62 }
  0xf3   : > { %v326_v1 = vsel %vm325_vm11, %v319_v59, %v324_v63  ;;  %v828_v2 = vld [vmem:[#allocation2 + $0x20] ss:$12 sps:$4 sm:$0xff]  }
  0xf4   : > { %329 = vst [vmem:[#allocation2 + $0x30] sm:$0x33] %v326_v1  ;;  %721 = vmatpush3.bf16.msra.mxu1 %v828_v2 }
  0xf5   : > { %722 = vmatprep.subr.bf16.mxu1 %v988_v11  ;;  %v478_v11 = vand.u32 127, %v201_v0 }
  0xf7   : > { %v829_v3 = vld [vmem:[#allocation2 + $0x1c] ss:$12 sps:$4 sm:$0xff]   ;;  %v831_v4 = vld [vmem:[#allocation2 + $0x18] ss:$12 sps:$4 sm:$0xff]   ;;  %v480_v13 = vadd.s32 256, %v478_v11  ;;  %v479_v16 = vadd.s32 128, %v478_v11 }
  0xf8   : > { %v832_v5 = vld [vmem:[#allocation2 + $0x38] ss:$0 sps:$4 sm:$0x33]   ;;  %398 = vmatprep.subr.bf16.mxu0 %v829_v3  ;;  %v1202_v17 = vmul.u32.u64.low 3817748708, %v478_v11  ;;  %v1203_v18 = vmul.u32.u64.high 3817748708, %v478_v11, %v1202_v17 }
  0xf9   : > { %399 = vmatpush1.bf16.msra.mxu0 %v831_v4  ;;  %v394_v6 = vsel %vm386_vm12, %v832_v5, 0  ;;  %v1199_v14 = vmul.u32.u64.low 3817748708, %v480_v13  ;;  %v1200_v15 = vmul.u32.u64.high 3817748708, %v480_v13, %v1199_v14 }
  0xfa   : > { %723 = vmatpush3.bf16.msra.mxu1 %v394_v6  ;;  %v1205_v19 = vmul.u32.u64.low 3817748708, %v479_v16  ;;  %v1206_v20 = vmul.u32.u64.high 3817748708, %v479_v16, %v1205_v19  ;;  %v487_v23 = vshrl.u32 %v1203_v18, 4 }
  0xfb   : > { %v340_v7 = vld [vmem:[#allocation2 + $0x30] sm:$0x33]  ;;  %v509_v21 = vshrl.u32 %v1200_v15, 4 }
  0xfc   : > { %v706_v9 = vcombine.high %v340_v7, %v340_v7  ;;  %v705_v10 = vcombine.low %v340_v7, %v340_v7  ;;  %v498_v24 = vshrl.u32 %v1206_v20, 4  ;;  %v488_v0 = vmul.u32 18, %v487_v23 }
  0xfd   : > { %725 = vmatmul.mubr.msk.bf16.vlgmr.msra.gmra.mrb[0].mxu1 %vm382_vm13, %v331_v8  ;;  %v510_v22 = vmul.u32 18, %v509_v21 }
  0xfe   : > { %708 = vmatprep.subr.msk.bf16.mxu0 %vm386_vm12, %v706_v9  ;;  %v388_v12 = vsel %vm386_vm12, %v705_v10, 0  ;;  %v499_v26 = vmul.u32 18, %v498_v24  ;;  %v489_v27 = vsub.s32 %v478_v11, %v488_v0 }
  0xff   : > { %401 = vmatpush1.bf16.msra.mxu0 %v388_v12  ;;  %v511_v25 = vsub.s32 %v480_v13, %v510_v22 }
 0x100   : > { %v500_v28 = vsub.s32 %v479_v16, %v499_v26  ;;  %vm514_vm1 = vcmp.ne.s32.totalorder %v489_v27, 0  ;;  %vm517_vm2 = vcmp.lt.s32.totalorder %v489_v27, 0  ;;  %v523_v31 = vadd.s32 18, %v489_v27 }
 0x101   : > { %vm516_vm14 = vcmp.ne.s32.totalorder %v511_v25, 0  ;;  %vm519_vm15 = vcmp.lt.s32.totalorder %v511_v25, 0  ;;  %v525_v29 = vadd.s32 18, %v511_v25  ;;  %vm520_vm5 = vmand %vm517_vm2, %vm514_vm1 }
 0x102   : > { %709 = vmatmul.mubr.msk.bf16.vlgmr.msra.gmra.mrb[0].mxu0 %vm382_vm13, %v331_v8  ;;  %vm522_vm0 = vmand %vm519_vm15, %vm516_vm14  ;;  %vm515_vm3 = vcmp.ne.s32.totalorder %v500_v28, 0  ;;  %vm518_vm4 = vcmp.lt.s32.totalorder %v500_v28, 0  ;;  %v524_v32 = vadd.s32 18, %v500_v28  ;;  %v526_v33 = vsel %vm520_vm5, %v523_v31, %v489_v27 }
 0x103   : > { %v528_v30 = vsel %vm522_vm0, %v525_v29, %v511_v25  ;;  %vm521_vm6 = vmand %vm518_vm4, %vm515_vm3  ;;  %vm529_vm8 = vcmp.lt.s32.totalorder %v526_v33, 16 }
 0x104   : > { %vm531_vm7 = vcmp.lt.s32.totalorder %v528_v30, 16  ;;  %v527_v35 = vsel %vm521_vm6, %v524_v32, %v500_v28 }
 0x105   : > { %vm530_vm9 = vcmp.lt.s32.totalorder %v527_v35, 16 }
 0x1d0   : > { %v471_v34 = vpop.f32.mrb[0].mxu1 }
 0x1d1   : > { %v540_v36 = vsel %vm531_vm7, %v471_v34, 0.0  ;;  %v726_v37 = vpop.f32.mrb[1].mxu1 }
 0x1d2   : > { %v474_v38 = vpop.f32.mrb[2].mxu1  ;;  %v550_v40 = vmul.f32 %v540_v36, %v540_v36  ;;  %v543_v47 = vsel %vm542_vm10, %v540_v36, 0.0 }
 0x1d3   : > { %v727_v39 = vpop.f32.mrb[3].mxu1 }
 0x1d4   : > { %v552_v51 = vsel %vm542_vm10, %v550_v40, 0.0 }
 0x1d5   : > { %v430_v41 = vpop.f32.mrb[0].mxu0 }
 0x1d6   : > { %v538_v42 = vsel %vm529_vm8, %v430_v41, 0.0  ;;  %v432_v43 = vpop.f32.mrb[1].mxu0 }
 0x1d7   : > { %v548_v44 = vmul.f32 %v538_v42, %v538_v42  ;;  %v539_v45 = vsel %vm530_vm9, %v432_v43, 0.0  ;;  %v434_v46 = vpop.f32.mrb[2].mxu0 }
 0x1d8   : > { %v541_v48 = vadd.f32 %v539_v45, %v538_v42  ;;  %v549_v49 = vmul.f32 %v539_v45, %v539_v45  ;;  %v435_v50 = vpop.f32.mrb[3].mxu0 }
 0x1da   : > { %v544_v52 = vadd.f32 %v543_v47, %v541_v48  ;;  %v551_v53 = vadd.f32 %v549_v49, %v548_v44 }
 0x1dc   : > { %545 = vadd.xlane.f32.xlu0 %v544_v52  ;;  %v553_v54 = vadd.f32 %v552_v51, %v551_v53 }
 0x1de   : > { %554 = vadd.xlane.f32.xlu1 %v553_v54 }
 0x269   : > { %v546_v55 = vpop.xlane.xlu0 %545 }
 0x26a   : > { %v547_v56 = vmul.f32 0.00390625, %v546_v55 }
 0x26b   : > { %v555_v57 = vpop.xlane.xlu1 %554 }
 0x26c   : > { %v556_v58 = vmul.f32 0.00390625, %v555_v57  ;;  %v557_v59 = vmul.f32 %v547_v56, %v547_v56  ;;  %v560_v63 = vsub.f32 %v430_v41, %v547_v56  ;;  %v561_v1 = vsub.f32 %v432_v43, %v547_v56 }
 0x26d   : > { %v562_v2 = vsub.f32 %v471_v34, %v547_v56 }
 0x26e   : > { %v558_v60 = vsub.f32 %v556_v58, %v557_v59 }
 0x270   : > { %v559_v61 = vmax.f32 %v558_v60, 0.0 }
 0x272   : > { %v563_v62 = vadd.f32 1e-05, %v559_v61 }
 0x274   : > { %835 = vrsqrt.f32 %v563_v62 }
 0x27e   : > { %v836_v3 = vpop.eup %835 }
 0x27f   : > { %v565_v4 = vmul.f32 %v836_v3, %v560_v63  ;;  %v566_v5 = vmul.f32 %v836_v3, %v561_v1  ;;  %v567_v6 = vmul.f32 %v836_v3, %v562_v2 }
 0x281   : > { %vm568_vm11 = vcmp.ge.f32.partialorder %v565_v4, 0.0  ;;  %vm569_vm12 = vcmp.ge.f32.partialorder %v566_v5, 0.0  ;;  %vm570_vm13 = vcmp.ge.f32.partialorder %v567_v6, 0.0  ;;  %v571_v7 = vmul.f32 0.2, %v565_v4 }
 0x282   : > { %v572_v8 = vmul.f32 0.2, %v566_v5  ;;  %v573_v9 = vmul.f32 0.2, %v567_v6 }
 0x283   : > { %v574_v10 = vsel %vm568_vm11, %v565_v4, %v571_v7 }
 0x284   : > { %v575_v12 = vsel %vm569_vm12, %v566_v5, %v572_v8  ;;  %v576_v11 = vsel %vm570_vm13, %v567_v6, %v573_v9  ;;  %577 = vst [vmem:[%s193_s24] sm:$0xff] %v574_v10 }
 0x285   : > { %578 = vst [vmem:[%s193_s24 + $0x8] sm:$0xff] %v575_v12  ;;  %579 = vst.msk [vmem:[%s193_s24 + $0x10] sm:$0xff] %vm542_vm10, %v576_v11 }
 0x286   : > { %908 = shalt.err (!%p905_p5)
}
 0x287   : > { %s909_s4 = scalar_lea.hbm %s1218_s6, 384  ;;  %s913_s18 = scalar_lea.hbm %s1270_s2, 768 }
 0x288   : > { %p910_p10 = scmp.ne.s32.totalorder %s1218_s6, %s909_s4  ;;  %p914_p7 = scmp.lt.u32.totalorder %s1218_s6, %s1270_s2 }
 0x289   : > { %p915_p3 = scmp.lt.u32.totalorder %s913_s18, %s909_s4  ;;  %p917_p11 = scmp.lt.u32.totalorder %s909_s4, %s1218_s6 }
 0x28a   : > { %p911_p4 = pnand %p910_p10, %p1114_p13 }
 0x28b   : > { %p916_p2 = por %p915_p3, %p914_p7 }
 0x28c   : > { %p912_p1 = pneg %p911_p4 }
 0x28d   : > { %p918_p6 = por %p917_p11, %p916_p2 }
 0x28f   : > { %p919_p8 = pnand %p918_p6, %p912_p1 }
 0x291   : > { %922 = shalt.err (!%p919_p8)
}
 0x292   : > { %745 = dma.vmem_to_hbm [thread:$0]  (%p1114_p13), %s1220_s23, 384, %s1218_s6, %s581_s12  }
 0x293 PF: > { %s609_s15 = sand.u32 1, %s961_s9   ;;  %p1289_p9 = scmp.ne.s32.totalorder %s1278_s20, 0 }
 0x294   : > { %p1290_p12 = scmp.ge.s32.totalorder %s981_s14, 2  ;;  %s610_s16 = scalar_lea.sflag [#allocation5], %s609_s15 }
 0x296   : > { %p756_p0 = pnand %p1290_p12, %p1289_p9 }
 0x298   : > { %956 = dma.done.wait (!%p756_p0), %s610_s16, 384  }
 0x299   : > { %958 = vsyncadd (!%p756_p0), %s610_s16, 4294966912  ;;  %s19_s14 = sadd.s32 1, %s981_s14   ;;  %s1291_s9 = smov %s965_s10 }
 0x29a   : > { %p16_p5 = scmp.ge.s32.totalorder %s19_s14, 4   ;;  %s1292_s10 = smov %s969_s11 }
 0x29b   : > { %s1293_s11 = smov %s1122_s28  ;;  %s1294_s12 = smov %s977_s13 }
 0x29c   : > { %s1295_s13 = smov %s1297_s25  ;;  %18 = sbr.rel (!%p16_p5) target bundleno = 7 (0x7), region = 78 }
 0x2a3   :  { %615 = vsyncpa [#allocation4], 1 }
 0x2a4   :  { %617 = vsyncpa [#allocation4 + $0x1], 1 }
 0x2a5   :  { %618 = vsyncpa [#allocation7], 1 }
 0x2a6   :  { %619 = vsyncpa [#allocation5], 1 }
 0x2a7   :  { %621 = vsyncpa [#allocation5 + $0x1], 1 }

</bundles_post_ra>
